<compile_context>
chip_gen: v7x
topology: tpu7x:2x2x1
jax: 0.10.0
libtpu: 0.0.40
codegen_flags: <defaults>
</compile_context>

<pallas_src>
import functools

import jax
import jax.numpy as jnp
from jax.experimental import pallas as pl
from jax.experimental.pallas import tpu as pltpu

_TM_MAX = 2048                            # max rows (patches) per tile
_LANE = 128                               # lane width
_TILE_VMEM_BUDGET = 28 * 1024 * 1024      # pipeline-buffer budget, safe on v7x (64 MiB)
_VMEM_LIMIT = 48 * 1024 * 1024            # scoped limit: > v5e/v6e defaults, < v7x physical


def _round_up(x, m):
    return ((x + m - 1) // m) * m


def _patch_embed_kernel(x_ref, w_ref, b_ref, o_ref):
    # x_ref: (TM, K)  patch-matrix tile (compute dtype, streamed)
    # w_ref: (Np, K)  conv weight in its native (E, K) layout (VMEM-resident)
    # b_ref: (1, Np)  f32 bias (VMEM-resident)
    # o_ref: (TM, Np) output tile
    acc = jax.lax.dot_general(
        x_ref[...], w_ref[...],
        dimension_numbers=(((1,), (1,)), ((), ())),   # contract K of both operands
        preferred_element_type=jnp.float32,
    )
    o_ref[...] = (acc + b_ref[...]).astype(o_ref.dtype)


def _pick_tile_m(m, k, n_pad, in_bytes, out_bytes):
    """Largest TM (multiple of 16) fitting the VMEM budget, keeping >=2 grid steps."""
    resident = 2 * n_pad * k * in_bytes + 2 * n_pad * 4      # weight + bias (dbl-buffered)
    tm = _TM_MAX
    while tm > 16:
        pipeline = 2 * tm * k * in_bytes + 2 * tm * n_pad * out_bytes
        if pipeline + resident <= _TILE_VMEM_BUDGET:
            break
        tm //= 2
    if m > 16:  # ensure >= 2 grid steps so both v7x TensorCores get work
        tm = min(tm, _round_up((m + 1) // 2, 16))
    return max(16, min(tm, _round_up(m, 16)))


@functools.partial(jax.jit,
                   static_argnames=("patch_size", "compute_dtype", "out_dtype"))
def patch_embedding(x, weight, bias, patch_size,
                    compute_dtype=jnp.bfloat16, out_dtype=None):
    """x: (B, C, H, W); weight: (E, C, P, P); bias: (E,) -> (B, n_patches, E)."""
    if out_dtype is None:
        out_dtype = compute_dtype
    B, C, H, W = x.shape
    E = weight.shape[0]
    P = patch_size
    hp, wp = H // P, W // P
    n_patches = hp * wp

    # Patch extraction: flatten each non-overlapping patch in (c, ph, pw) order
    # (matches PyTorch's Conv2d weight flattening).  Single XLA transpose copy;
    # the compute_dtype cast fuses into it, and allow_input_fusion below lets
    # XLA pull it into the pallas_call operand when possible.
    xp = x.reshape(B, C, hp, P, wp, P)
    xp = jnp.transpose(xp, (0, 2, 4, 1, 3, 5))                       # (B, hp, wp, C, P, P)
    xp = xp.reshape(B * n_patches, C * P * P).astype(compute_dtype)  # (M, K)

    M, K = xp.shape
    N = E
    # Pad the output/lane dim only when E is not already lane-dense.
    Np = _round_up(N, _LANE) if N % _LANE else N

    w2d = weight.reshape(E, K)                    # native (E, K): no transpose copy
    if Np != N:
        w2d = jnp.pad(w2d, ((0, Np - N), (0, 0)))
    w2d = w2d.astype(compute_dtype)

    b2d = bias.astype(jnp.float32)
    if Np != N:
        b2d = jnp.pad(b2d, (0, Np - N))
    b2d = b2d.reshape(1, Np)

    in_b = jnp.dtype(compute_dtype).itemsize
    out_b = jnp.dtype(out_dtype).itemsize
    tm = _pick_tile_m(M, K, Np, in_b, out_b)

    cost = pl.CostEstimate(
        flops=2 * M * K * Np,
        transcendentals=0,
        bytes_accessed=M * K * in_b + Np * K * in_b + M * Np * out_b + Np * 4,
    )

    out = pl.pallas_call(
        _patch_embed_kernel,
        out_shape=jax.ShapeDtypeStruct((M, Np), out_dtype),
        grid=(pl.cdiv(M, tm),),
        in_specs=[
            pl.BlockSpec((tm, K), lambda i: (i, 0)),    # streamed patch rows
            pl.BlockSpec((Np, K), lambda i: (0, 0)),    # weight: VMEM-resident
            pl.BlockSpec((1, Np), lambda i: (0, 0)),    # bias:   VMEM-resident
        ],
        out_specs=pl.BlockSpec((tm, Np), lambda i: (i, 0)),
        compiler_params=pltpu.CompilerParams(
            dimension_semantics=("parallel",),
            vmem_limit_bytes=_VMEM_LIMIT,
            allow_input_fusion=[True, False, False],
        ),
        cost_estimate=cost,
    )(xp, w2d, b2d)

    if Np != N:
        out = out[:, :N]
    return out.reshape(B, n_patches, E)


def _reference(x, weight, bias, patch_size):
    # Pure-JAX reference (conv via lax.conv_general_dilated, NCHW/OIHW).
    y = jax.lax.conv_general_dilated(
        x, weight,
        window_strides=(patch_size, patch_size),
        padding="VALID",
        dimension_numbers=("NCHW", "OIHW", "NCHW"),
    ) + bias.reshape(1, -1, 1, 1)
    B, E, hp, wp = y.shape
    return jnp.transpose(y.reshape(B, E, hp * wp), (0, 2, 1))


if __name__ == "__main__":
    image_size = 16
    patch_size = 4
    in_channels = 4
    embed_dim = 32
    batch = 2

    key = jax.random.PRNGKey(0)
    kx, kw, kb = jax.random.split(key, 3)

    x = jax.random.normal(kx, (batch, in_channels, image_size, image_size),
                          dtype=jnp.float32)

    # Deterministic param init (Conv2d-style uniform bound).
    fan_in = in_channels * patch_size * patch_size
    bound = 1.0 / (fan_in ** 0.5)
    weight = jax.random.uniform(kw, (embed_dim, in_channels, patch_size, patch_size),
                                minval=-bound, maxval=bound, dtype=jnp.float32)
    bias = jax.random.uniform(kb, (embed_dim,), minval=-bound, maxval=bound,
                              dtype=jnp.float32)

    ref = _reference(x, weight, bias, patch_size)
    n_patches = (image_size // patch_size) ** 2

    # f32 operand / f32 output path: exact check against the conv reference.
    out_f32 = jax.block_until_ready(
        patch_embedding(x, weight, bias, patch_size=patch_size,
                        compute_dtype=jnp.float32))
    assert out_f32.shape == (batch, n_patches, embed_dim)
    assert out_f32.dtype == jnp.float32
    assert jnp.allclose(out_f32, ref, atol=1e-4, rtol=1e-4)

    # Default path: bf16 operands + bf16 output, f32 MXU accumulation.
    out_bf16 = jax.block_until_ready(
        patch_embedding(x, weight, bias, patch_size=patch_size))
    assert out_bf16.shape == (batch, n_patches, embed_dim)
    assert out_bf16.dtype == jnp.bfloat16
    assert jnp.allclose(out_bf16.astype(jnp.float32), ref, atol=5e-2, rtol=5e-2)

    print("KERNEL_OK")
</pallas_src>

<mosaic_0001>
module attributes {stable_mosaic.version = 11 : i64} {
  func.func @_patch_embed_kernel(%arg0: i32, %arg1: memref<16x64xf32, #tpu.memory_space<vmem>>, %arg2: memref<128x64xf32, #tpu.memory_space<vmem>>, %arg3: memref<1x128xf32, #tpu.memory_space<vmem>>, %arg4: memref<16x128xf32, #tpu.memory_space<vmem>>) attributes {dimension_semantics = [#tpu.dimension_semantics<parallel>], iteration_bounds = array<i64: 2>, scalar_prefetch = 0 : i64, scratch_operands = 0 : i64, tpu.core_type = #tpu.core_type<tc>, window_params = [{transform_indices = @transform_0, window_bounds = array<i64: 16, 64>}, {pipeline_mode = #tpu.pipeline_mode<synchronous>, transform_indices = @transform_1, window_bounds = array<i64: 128, 64>}, {pipeline_mode = #tpu.pipeline_mode<synchronous>, transform_indices = @transform_2, window_bounds = array<i64: 1, 128>}, {transform_indices = @transform_3, window_bounds = array<i64: 16, 128>}]} {
    %c0 = arith.constant 0 : index
    %c0_0 = arith.constant 0 : index
    %0 = vector.load %arg1[%c0, %c0_0] : memref<16x64xf32, #tpu.memory_space<vmem>>, vector<16x64xf32>
    %c0_1 = arith.constant 0 : index
    %c0_2 = arith.constant 0 : index
    %1 = vector.load %arg2[%c0_1, %c0_2] : memref<128x64xf32, #tpu.memory_space<vmem>>, vector<128x64xf32>
    %cst = arith.constant dense<0.000000e+00> : vector<16x128xf32>
    %2 = tpu.matmul %0, %1, %cst {dimension_numbers = #tpu.dot_dimension_numbers<[1], [1], [0], [0], [0, 0, 1, 0], [], []>} : vector<16x64xf32>, vector<128x64xf32>, vector<16x128xf32> -> vector<16x128xf32>
    %c0_3 = arith.constant 0 : index
    %c0_4 = arith.constant 0 : index
    %3 = vector.load %arg3[%c0_3, %c0_4] : memref<1x128xf32, #tpu.memory_space<vmem>>, vector<1x128xf32>
    %4 = vector.broadcast %3 : vector<1x128xf32> to vector<16x128xf32>
    %5 = arith.addf %2, %4 : vector<16x128xf32>
    %c0_5 = arith.constant 0 : index
    %c0_6 = arith.constant 0 : index
    %6 = vector.load %arg4[%c0_5, %c0_6] : memref<16x128xf32, #tpu.memory_space<vmem>>, vector<16x128xf32>
    tpu.vector_store %arg4[%c0_5, %c0_6], %5 {strides = array<i32>} : memref<16x128xf32, #tpu.memory_space<vmem>>, vector<16x128xf32>,
    return
  }
  func.func @transform_0(%arg0: i32) -> (i32, i32) {
    %c0_i32 = arith.constant 0 : i32
    %c0_i32_0 = arith.constant 0 : i32
    return %arg0, %c0_i32 : i32, i32
  }
  func.func @transform_1(%arg0: i32) -> (i32, i32) {
    %c0_i32 = arith.constant 0 : i32
    %c0_i32_0 = arith.constant 0 : i32
    %c0_i32_1 = arith.constant 0 : i32
    return %c0_i32, %c0_i32_0 : i32, i32
  }
  func.func @transform_2(%arg0: i32) -> (i32, i32) {
    %c0_i32 = arith.constant 0 : i32
    %c0_i32_0 = arith.constant 0 : i32
    %c0_i32_1 = arith.constant 0 : i32
    return %c0_i32, %c0_i32_0 : i32, i32
  }
  func.func @transform_3(%arg0: i32) -> (i32, i32) {
    %c0_i32 = arith.constant 0 : i32
    %c0_i32_0 = arith.constant 0 : i32
    return %arg0, %c0_i32 : i32, i32
  }
}

</mosaic_0001>

<bundles_post_ra>
// kernel: patch_embedding.1
= control target key start
LH: loop header
LB: loop body
LE: loop exit
PB: predicated region body
PF: predicated region fallthrough
CT: control target
= control target key end

     0   :  { %8 = vsyncpa [#allocation3], 0  ;;  %s863_s0 = inlined_call_operand.vmem [shape: f32[32,64], index: 0, kind: input, shape index: {}]   ;;  %s864_s1 = inlined_call_operand.vmem [shape: f32[128,64], index: 1, kind: input, shape index: {}]   ;;  %s865_s2 = inlined_call_operand.vmem [shape: f32[1,128], index: 2, kind: input, shape index: {}]   ;;  %s866_s3 = inlined_call_operand.hbm [shape: f32[32,128], index: 3, kind: output, shape index: {}]  }
   0x1   :  { %10 = vsyncpa [#allocation3 + $0x1], 0  ;;  %s666_s12 = smov 0   ;;  %s668_s13 = smov 0  }
   0x2   :  { %s670_s14 = smov 0   ;;  %s672_s15 = smov 0  }
   0x3 LB: > { %s687_s16 = sadd.s32 4294967295, %s641_s15   ;;  %s405_s17 = sadd.s32 4294967294, %s641_s15   ;;  %s641_s15 = sphi %s672_s15, %s874_s15   ;;  %s637_s14 = sphi %s670_s14, %s873_s14   ;;  %s633_s13 = sphi %s668_s13, %s872_s13   ;;  %s629_s12 = sphi %s666_s12, %s871_s12  }
   0x4   : > { %s691_s18 = sadd.s32 1, %s641_s15   ;;  %s91_s19 = sadd.s32 1, %s637_s14 }
   0x5   : > { %s88_s20 = ssub.s32 %s641_s15, %s691_s18  ;;  %p101_p0 = scmp.ne.s32.totalorder %s637_s14, %s633_s13 }
   0x6   : > { %p89_p1 = scmp.eq.s32.totalorder %s88_s20, 0  ;;  %p102_p2 = scmp.eq.s32.totalorder %s687_s16, 1 }
   0x7   : > { %p107_p3 = scmp.ne.s32.totalorder %s633_s13, %s629_s12  ;;  %p108_p4 = scmp.eq.s32.totalorder %s405_s17, 1 }
   0x8   : > { %s702_s21 = scalar_select %p89_p1, %s637_s14, %s91_s19  }
   0x9   : > { %p704_p5 = por %p102_p2, %p101_p0  ;;  %p708_p6 = por %p108_p4, %p107_p3 }
   0xa   : > { %p408_p7 = scmp.ge.s32.totalorder %s641_s15, 1  ;;  %p141_p8 = scmp.lt.s32.totalorder %s641_s15, 3 }
   0xc   : > { %p142_p9 = pnand %p408_p7, %p141_p8 }
   0xd   : > { %v174_v0 = vld [vmem:[%s864_s1] sm:$0xff] (!%p142_p9)  ;;  %v175_v1 = vld [vmem:[%s864_s1 + $0x8] sm:$0xff] (!%p142_p9)  ;;  %vm197_vm0 = vcmask (!%p142_p9), 523264   ;;  %v176_v2 = vld [vmem:[%s864_s1 + $0x10] sm:$0xff] (!%p142_p9)  ;;  %s410_s30 = sshll.u32 (!%p142_p9), %s687_s16, 1  ;;  %s162_s26 = sand.u32 (!%p142_p9), 1, %s633_s13  }
   0xe   : > { %145 = sbr.rel (%p142_p9) target bundleno = 310 (0x136), region = 32  ;;  %v490_v3 = vpack.c.bf16 (!%p142_p9), %v175_v1, %v174_v0  ;;  %vm726_vm1 = vmpackc.low (!%p142_p9), %vm197_vm0, %vm197_vm0  ;;  %v177_v5 = vld [vmem:[%s864_s1 + $0x18] sm:$0xff] (!%p142_p9)  ;;  %p166_p10 = scmp.lt.s32.totalorder (!%p142_p9), %s410_s30, 3  ;;  %v178_v7 = vld [vmem:[%s864_s1 + $0x20] sm:$0xff] (!%p142_p9) }
   0xf   : > { %v496_v6 = vpack.c.bf16 (!%p142_p9), %v177_v5, %v176_v2  ;;  %v179_v8 = vld [vmem:[%s864_s1 + $0x28] sm:$0xff] (!%p142_p9)  ;;  %v180_v11 = vld [vmem:[%s864_s1 + $0x30] sm:$0xff] (!%p142_p9)  ;;  %v181_v12 = vld [vmem:[%s864_s1 + $0x38] sm:$0xff] (!%p142_p9)  ;;  %s409_s27 = sshll.u32 (!%p142_p9), %s162_s26, 4  ;;  %s436_s5 = sshll.u32 (!%p142_p9), %s687_s16, 8 }
  0x10   : > { %492 = vmatprep.subr.msk.bf16.mxu0 (!%p142_p9), %vm726_vm1, %v490_v3  ;;  %v502_v10 = vpack.c.bf16 (!%p142_p9), %v179_v8, %v178_v7  ;;  %v508_v13 = vpack.c.bf16 (!%p142_p9), %v181_v12, %v180_v11  ;;  %v182_v14 = vld [vmem:[%s864_s1 + $0x40] sm:$0xff] (!%p142_p9)  ;;  %v183_v15 = vld [vmem:[%s864_s1 + $0x48] sm:$0xff] (!%p142_p9)  ;;  %v184_v17 = vld [vmem:[%s864_s1 + $0x50] sm:$0xff] (!%p142_p9)  ;;  %s820_s7 = scalar_lea.hbm (!%p142_p9), %s866_s3, %s436_s5  ;;  %s822_s8 = scalar_lea.sflag (!%p142_p9), [#allocation3], %s162_s26 }
  0x11   : > { %495 = vmatpush3.bf16.xpose.msk.msra.mxu0 (!%p142_p9), %vm726_vm1, %v490_v3  ;;  %v514_v16 = vpack.c.bf16 (!%p142_p9), %v183_v15, %v182_v14  ;;  %v185_v18 = vld [vmem:[%s864_s1 + $0x58] sm:$0xff] (!%p142_p9)  ;;  %v186_v20 = vld [vmem:[%s864_s1 + $0x60] sm:$0xff] (!%p142_p9)  ;;  %v187_v21 = vld [vmem:[%s864_s1 + $0x68] sm:$0xff] (!%p142_p9)  ;;  %s643_s16 = smov (!%p142_p9), [#allocation2]  }
  0x12   : > { %498 = vmatprep.subr.msk.bf16.mxu0 (!%p142_p9), %vm726_vm1, %v496_v6  ;;  %v520_v19 = vpack.c.bf16 (!%p142_p9), %v185_v18, %v184_v17  ;;  %v526_v22 = vpack.c.bf16 (!%p142_p9), %v187_v21, %v186_v20  ;;  %v188_v23 = vld [vmem:[%s864_s1 + $0x70] sm:$0xff] (!%p142_p9)  ;;  %v189_v24 = vld [vmem:[%s864_s1 + $0x78] sm:$0xff] (!%p142_p9)  ;;  %v412_v27 = vld [vmem:[%s865_s2] ss:$0 sm:$0xff] (!%p142_p9)  ;;  %s583_s10 = sshll.u32 (!%p142_p9), %s643_s16, 4  ;;  %s584_s10 = int_to_ptr.vmem [resolvable:$false] %s583_s10 }
  0x13   : > { %v532_v25 = vpack.c.bf16 (!%p142_p9), %v189_v24, %v188_v23  ;;  %s585_s11 = scalar_lea.vmem (!%p142_p9), %s584_s10, 512 }
  0x15   : > { %s876_s30 = smov (!%p166_p10, %s410_s30), 3 }
  0x16   : > { %s411_s6 = sshll.u32 %s876_s30, 3  ;;  %s164_s30 = scalar_lea.vmem [#allocation2], %s409_s27 }
  0x17   : > { %s748_s19 = scalar_lea.vmem %s863_s0, %s411_s6  ;;  %s343_s4 = sshll.u32 %s164_s30, 4  ;;  %s815_s4 = int_to_ptr.vmem [resolvable:$true] %s343_s4 }
  0x18   : > { %v172_v9 = vld [vmem:[%s748_s19] sm:$0xff]  ;;  %v173_v26 = vld [vmem:[%s748_s19 + $0x8] sm:$0xff]  ;;  %s579_s9 = scalar_lea.vmem %s815_s4, 256  ;;  %p586_p0 = scmp.lt.s32.totalorder %s815_s4, %s584_s10 }
  0x19   : > { %487 = vmatprep.mubr.msk.f32.mxu0 %vm197_vm0, %v172_v9  ;;  %501 = vmatpush3.bf16.xpose.msk.msra.mxu0 %vm726_vm1, %v496_v6  ;;  %p580_p11 = scmp.ne.s32.totalorder %s815_s4, %s579_s9  ;;  %p587_p1 = scmp.lt.s32.totalorder %s585_s11, %s579_s9 }
  0x1a   : > { %504 = vmatprep.subr.msk.bf16.mxu0 %vm726_vm1, %v502_v10 }
  0x1b   : > { %p581_p12 = pnand %p580_p11, %p704_p5  ;;  %p588_p2 = por %p587_p1, %p586_p0 }
  0x1d   : > { %p582_p13 = pneg %p581_p12 }
  0x1f   : > { %p589_p3 = pnand %p588_p2, %p582_p13 }
  0x21   : > { %507 = vmatpush3.bf16.xpose.msk.msra.mxu0 %vm726_vm1, %v502_v10 }
  0x22   : > { %510 = vmatprep.subr.msk.bf16.mxu0 %vm726_vm1, %v508_v13 }
  0x29   : > { %513 = vmatpush3.bf16.xpose.msk.msra.mxu0 %vm726_vm1, %v508_v13 }
  0x2a   : > { %516 = vmatprep.subr.msk.bf16.mxu0 %vm726_vm1, %v514_v16 }
  0x31   : > { %519 = vmatpush3.bf16.xpose.msk.msra.mxu0 %vm726_vm1, %v514_v16 }
  0x32   : > { %522 = vmatprep.subr.msk.bf16.mxu0 %vm726_vm1, %v520_v19 }
  0x39   : > { %525 = vmatpush3.bf16.xpose.msk.msra.mxu0 %vm726_vm1, %v520_v19 }
  0x3a   : > { %528 = vmatprep.subr.msk.bf16.mxu0 %vm726_vm1, %v526_v22 }
  0x41   : > { %531 = vmatpush3.bf16.xpose.msk.msra.mxu0 %vm726_vm1, %v526_v22 }
  0x42   : > { %534 = vmatprep.subr.msk.bf16.mxu0 %vm726_vm1, %v532_v25 }
  0x49   : > { %537 = vmatpush3.bf16.xpose.msk.msra.mxu0 %vm726_vm1, %v532_v25 }
  0x50   : > { %488 = vmatmul.mubr.msk.f32.vlgmr.msra.gmra.mrb[0].mxu0 %vm197_vm0, %v173_v26 }
 0x123   : > { %v489_v28 = vpop.f32.mrb[0].mxu0 }
 0x124   : > { %v324_v29 = vadd.f32 %v489_v28, %v412_v27  ;;  %v318_v30 = vpop.f32.mrb[1].mxu0 }
 0x125   : > { %v319_v31 = vadd.f32 %v412_v27, %v318_v30 }
 0x126   : > { %328 = vst [vmem:[%s164_s30 + $0x8] sm:$0xff] %v324_v29 }
 0x127   : > { %327 = vst [vmem:[%s164_s30] sm:$0xff] %v319_v31 }
 0x128   : > { %592 = shalt.err (!%p589_p3)
}
 0x129   : > { %s593_s17 = scalar_lea.hbm %s820_s7, 256  ;;  %s597_s25 = scalar_lea.hbm %s866_s3, 512 }
 0x12a   : > { %p594_p4 = scmp.ne.s32.totalorder %s820_s7, %s593_s17  ;;  %p598_p9 = scmp.lt.u32.totalorder %s820_s7, %s866_s3 }
 0x12b   : > { %p599_p10 = scmp.lt.u32.totalorder %s597_s25, %s593_s17  ;;  %p601_p12 = scmp.lt.u32.totalorder %s593_s17, %s820_s7 }
 0x12c   : > { %p595_p7 = pnand %p594_p4, %p704_p5 }
 0x12d   : > { %p600_p11 = por %p599_p10, %p598_p9 }
 0x12e   : > { %p596_p8 = pneg %p595_p7 }
 0x12f   : > { %p602_p13 = por %p601_p12, %p600_p11 }
 0x131   : > { %p603_p0 = pnand %p602_p13, %p596_p8 }
 0x133   : > { %606 = shalt.err (!%p603_p0)
}
 0x134   : > { %s644_s28 = smov 128   ;;  %s645_s29 = smov 8  }
 0x135   : > { %538 = dma.vmem_to_hbm [thread:$0]  (%p704_p5), %s815_s4, 256, %s820_s7, %s822_s8, %s644_s28, %s644_s28, %s645_s29  }
 0x136 PF: > { %p544_p1 = scmp.ge.s32.totalorder %s641_s15, 2  ;;  %s358_s30 = sand.u32 1, %s629_s12  }
 0x137   : > { %s359_s5 = scalar_lea.sflag [#allocation3], %s358_s30 }
 0x138   : > { %p541_p2 = pnand %p544_p1, %p708_p6 }
 0x13a   : > { %624 = dma.done.wait (!%p541_p2), %s359_s5, 256  }
 0x13b   : > { %626 = vsyncadd (!%p541_p2), %s359_s5, 4294967040  ;;  %p13_p3 = scmp.ge.s32.totalorder %s691_s18, 4   ;;  %s871_s12 = smov %s633_s13 }
 0x13c   : > { %s872_s13 = smov %s637_s14  ;;  %s873_s14 = smov %s702_s21 }
 0x13d   : > { %s874_s15 = smov %s691_s18  ;;  %15 = sbr.rel (!%p13_p3) target bundleno = 3 (0x3), region = 67 }
 0x144   :  { %364 = vsyncpa [#allocation3], 1 }
 0x145   :  { %366 = vsyncpa [#allocation3 + $0x1], 1 }

</bundles_post_ra>
